<compile_context>
chip_gen: v5e
topology: v5e:2x2
jax: 0.10.0
libtpu: 0.0.40
codegen_flags: <defaults>
</compile_context>

<pallas_src>
import functools

import jax
import jax.numpy as jnp
from jax.experimental import pallas as pl
from jax.experimental.pallas import tpu as pltpu

EPS = 1e-5   # PyTorch BatchNorm default eps
LANE = 128   # TPU lane width


def gsr2layer_kernel(x_ref, w1_ref, g1_ref, b1_ref, w2_ref, out_ref, *, n_valid):
    inv_b = 1.0 / x_ref.shape[0]  # static python float (batch per grid step)

    # ---- fc1: [B, S] @ [S, M] -> [B, M], f32 MXU accumulate ----
    h = jnp.dot(x_ref[...], w1_ref[...], preferred_element_type=jnp.float32)

    # ---- bn1 (affine) + ReLU: one-pass stats, single folded FMA ----
    mean1 = jnp.sum(h, axis=0, keepdims=True) * inv_b
    ex2_1 = jnp.sum(h * h, axis=0, keepdims=True) * inv_b
    var1 = ex2_1 - mean1 * mean1                       # biased variance (f32)
    a1 = g1_ref[...] * jax.lax.rsqrt(var1 + EPS)       # gamma folded into scale
    h = jnp.maximum(h * a1 + (b1_ref[...] - mean1 * a1), 0.0)

    # ---- fc2: [B, M] @ [M, L_pad] -> [B, L_pad], f32 MXU ----
    y = jnp.dot(h, w2_ref[...], preferred_element_type=jnp.float32)

    # ---- bn2 (no affine): one-pass stats ----
    mean2 = jnp.sum(y, axis=0, keepdims=True) * inv_b
    ex2_2 = jnp.sum(y * y, axis=0, keepdims=True) * inv_b
    var2 = ex2_2 - mean2 * mean2
    y = (y - mean2) * jax.lax.rsqrt(var2 + EPS)
    # (zero-padded w2 columns give y == 0 here; they are masked out below.)

    # ---- log_softmax over the valid label lanes only ----
    lane_idx = jax.lax.broadcasted_iota(jnp.int32, y.shape, 1)
    valid = lane_idx < n_valid
    y = jnp.where(valid, y, jnp.float32(-jnp.inf))      # exclude pad from max/LSE
    m = jnp.max(y, axis=1, keepdims=True)
    z = y - m
    lse = jnp.log(jnp.sum(jnp.exp(z), axis=1, keepdims=True))
    # Padded lanes get 0.0 (finite) so the padded tensor is safe downstream.
    out_ref[...] = jnp.where(valid, z - lse, 0.0)


def prepare_params(w1_t, gamma1, beta1, w2_t):
    """One-time weight prep (outside the hot path): lane-dense pad of the label dim."""
    M, L = w2_t.shape
    L_pad = pl.cdiv(L, LANE) * LANE
    w2_pad = jnp.pad(w2_t, ((0, 0), (0, L_pad - L))).astype(jnp.float32)
    return (w1_t.astype(jnp.float32),
            gamma1.reshape(1, -1).astype(jnp.float32),
            beta1.reshape(1, -1).astype(jnp.float32),
            w2_pad)


@functools.partial(jax.jit, static_argnames=("batch_per_step", "label_num"))
def gsr2layer_forward(x, w1_t, gamma1, beta1, w2_pad, *, batch_per_step, label_num):
    """x: [num_batches * batch_per_step, S] (stacked independent batches).

    Returns padded log-probs [num_batches * batch_per_step, L_pad]; lanes
    >= label_num are 0.0. Each batch_per_step-row block is one independent
    BatchNorm batch (one grid step).
    """
    total, S = x.shape
    M = w1_t.shape[1]
    L_pad = w2_pad.shape[1]
    num_batches = total // batch_per_step

    const = lambda i: (0, 0)   # weights / BN params: DMA'd once, VMEM-resident

    return pl.pallas_call(
        functools.partial(gsr2layer_kernel, n_valid=label_num),
        out_shape=jax.ShapeDtypeStruct((total, L_pad), jnp.float32),
        grid=(num_batches,),
        in_specs=[
            pl.BlockSpec((batch_per_step, S), lambda i: (i, 0)),  # x block per step
            pl.BlockSpec((S, M), const),                          # w1
            pl.BlockSpec((1, M), const),                          # gamma1
            pl.BlockSpec((1, M), const),                          # beta1
            pl.BlockSpec((M, L_pad), const),                      # w2 (padded)
        ],
        out_specs=pl.BlockSpec((batch_per_step, L_pad), lambda i: (i, 0)),
        compiler_params=pltpu.CompilerParams(
            dimension_semantics=("parallel",)),   # dual-TC sharding on v7x
    )(x, w1_t, gamma1, beta1, w2_pad)


def reference_forward(x, w1_t, gamma1, beta1, w2_t):
    """Pure-JAX f32 reference for ONE batch (matches PyTorch batch-stat BN)."""
    h = jnp.dot(x, w1_t, preferred_element_type=jnp.float32)
    m1 = h.mean(axis=0, keepdims=True)
    v1 = ((h - m1) ** 2).mean(axis=0, keepdims=True)
    h = (h - m1) / jnp.sqrt(v1 + EPS) * gamma1 + beta1
    h = jnp.maximum(h, 0.0)
    y = jnp.dot(h, w2_t, preferred_element_type=jnp.float32)
    m2 = y.mean(axis=0, keepdims=True)
    v2 = ((y - m2) ** 2).mean(axis=0, keepdims=True)
    y = (y - m2) / jnp.sqrt(v2 + EPS)
    return jax.nn.log_softmax(y, axis=1)


if __name__ == "__main__":
    # Small shapes consistent with the module (sample_size, model_size, label_num).
    # NB independent batches of B rows are stacked and run in one pallas_call.
    NB, B, SAMPLE, MODEL, LABEL = 4, 128, 128, 128, 35

    key = jax.random.PRNGKey(0)
    kx, kw1, kw2 = jax.random.split(key, 3)

    x = jax.random.normal(kx, (NB * B, SAMPLE), dtype=jnp.float32)

    # nn.Linear default init: U(-1/sqrt(fan_in), 1/sqrt(fan_in)); PyTorch stores
    # weights as [out, in]; pre-transposed here to [in, out].
    bound1 = 1.0 / jnp.sqrt(SAMPLE)
    w1_t = jax.random.uniform(kw1, (SAMPLE, MODEL), jnp.float32, -bound1, bound1)
    bound2 = 1.0 / jnp.sqrt(MODEL)
    w2_t = jax.random.uniform(kw2, (MODEL, LABEL), jnp.float32, -bound2, bound2)

    # BatchNorm1d affine params (default init): gamma=1, beta=0. Kept 2D for TPU.
    gamma1 = jnp.ones((1, MODEL), dtype=jnp.float32)
    beta1 = jnp.zeros((1, MODEL), dtype=jnp.float32)

    # One-time weight prep (hoisted out of the per-call hot path).
    w1_p, g1_p, b1_p, w2_p = prepare_params(w1_t, gamma1, beta1, w2_t)

    out_pad = gsr2layer_forward(x, w1_p, g1_p, b1_p, w2_p,
                                batch_per_step=B, label_num=LABEL)
    out_pad = jax.block_until_ready(out_pad)

    # One-time slice for verification only (downstream could keep the padded,
    # finite [*, 128] layout directly).
    out = out_pad[:, :LABEL]

    ref = jnp.concatenate(
        [reference_forward(x[i * B:(i + 1) * B], w1_t, gamma1, beta1, w2_t)
         for i in range(NB)], axis=0)

    assert out.shape == (NB * B, LABEL)
    assert bool(jnp.all(jnp.isfinite(out_pad)))
    assert jnp.allclose(out, ref, atol=2e-3, rtol=2e-3)

    print("KERNEL_OK")
</pallas_src>

<mosaic_0001>
module attributes {stable_mosaic.version = 11 : i64} {
  func.func @gsr2layer_kernel(%arg0: i32, %arg1: memref<128x128xf32, #tpu.memory_space<vmem>>, %arg2: memref<128x128xf32, #tpu.memory_space<vmem>>, %arg3: memref<1x128xf32, #tpu.memory_space<vmem>>, %arg4: memref<1x128xf32, #tpu.memory_space<vmem>>, %arg5: memref<128x128xf32, #tpu.memory_space<vmem>>, %arg6: memref<128x128xf32, #tpu.memory_space<vmem>>) attributes {dimension_semantics = [#tpu.dimension_semantics<parallel>], iteration_bounds = array<i64: 4>, scalar_prefetch = 0 : i64, scratch_operands = 0 : i64, tpu.core_type = #tpu.core_type<tc>, window_params = [{transform_indices = @transform_0, window_bounds = array<i64: 128, 128>}, {pipeline_mode = #tpu.pipeline_mode<synchronous>, transform_indices = @transform_1, window_bounds = array<i64: 128, 128>}, {pipeline_mode = #tpu.pipeline_mode<synchronous>, transform_indices = @transform_2, window_bounds = array<i64: 1, 128>}, {pipeline_mode = #tpu.pipeline_mode<synchronous>, transform_indices = @transform_3, window_bounds = array<i64: 1, 128>}, {pipeline_mode = #tpu.pipeline_mode<synchronous>, transform_indices = @transform_4, window_bounds = array<i64: 128, 128>}, {transform_indices = @transform_5, window_bounds = array<i64: 128, 128>}]} {
    %c0 = arith.constant 0 : index
    %c0_0 = arith.constant 0 : index
    %0 = vector.load %arg1[%c0, %c0_0] : memref<128x128xf32, #tpu.memory_space<vmem>>, vector<128x128xf32>
    %c0_1 = arith.constant 0 : index
    %c0_2 = arith.constant 0 : index
    %1 = vector.load %arg2[%c0_1, %c0_2] : memref<128x128xf32, #tpu.memory_space<vmem>>, vector<128x128xf32>
    %cst = arith.constant dense<0.000000e+00> : vector<128x128xf32>
    %2 = tpu.matmul %0, %1, %cst {dimension_numbers = #tpu.dot_dimension_numbers<[1], [0], [0], [1], [0, 0, 1, 1], [], []>} : vector<128x128xf32>, vector<128x128xf32>, vector<128x128xf32> -> vector<128x128xf32>
    %cst_3 = arith.constant dense<0.000000e+00> : vector<128xf32>
    %3 = vector.multi_reduction <add>, %2, %cst_3 [0] : vector<128x128xf32> to vector<128xf32>
    %4 = vector.shape_cast %3 : vector<128xf32> to vector<1x128xf32>
    %cst_4 = arith.constant 7.812500e-03 : f32
    %5 = vector.broadcast %cst_4 : f32 to vector<1x128xf32>
    %6 = arith.mulf %4, %5 : vector<1x128xf32>
    %7 = arith.mulf %2, %2 : vector<128x128xf32>
    %cst_5 = arith.constant dense<0.000000e+00> : vector<128xf32>
    %8 = vector.multi_reduction <add>, %7, %cst_5 [0] : vector<128x128xf32> to vector<128xf32>
    %9 = vector.shape_cast %8 : vector<128xf32> to vector<1x128xf32>
    %cst_6 = arith.constant 7.812500e-03 : f32
    %10 = vector.broadcast %cst_6 : f32 to vector<1x128xf32>
    %11 = arith.mulf %9, %10 : vector<1x128xf32>
    %12 = arith.mulf %6, %6 : vector<1x128xf32>
    %13 = arith.subf %11, %12 : vector<1x128xf32>
    %c0_7 = arith.constant 0 : index
    %c0_8 = arith.constant 0 : index
    %14 = vector.load %arg3[%c0_7, %c0_8] : memref<1x128xf32, #tpu.memory_space<vmem>>, vector<1x128xf32>
    %cst_9 = arith.constant 9.99999974E-6 : f32
    %15 = vector.broadcast %cst_9 : f32 to vector<1x128xf32>
    %16 = arith.addf %13, %15 : vector<1x128xf32>
    %17 = math.rsqrt %16 : vector<1x128xf32>
    %18 = arith.mulf %14, %17 : vector<1x128xf32>
    %19 = vector.broadcast %18 : vector<1x128xf32> to vector<128x128xf32>
    %20 = arith.mulf %2, %19 : vector<128x128xf32>
    %c0_10 = arith.constant 0 : index
    %c0_11 = arith.constant 0 : index
    %21 = vector.load %arg4[%c0_10, %c0_11] : memref<1x128xf32, #tpu.memory_space<vmem>>, vector<1x128xf32>
    %22 = arith.mulf %6, %18 : vector<1x128xf32>
    %23 = arith.subf %21, %22 : vector<1x128xf32>
    %24 = vector.broadcast %23 : vector<1x128xf32> to vector<128x128xf32>
    %25 = arith.addf %20, %24 : vector<128x128xf32>
    %cst_12 = arith.constant 0.000000e+00 : f32
    %26 = vector.broadcast %cst_12 : f32 to vector<128x128xf32>
    %27 = arith.maximumf %25, %26 : vector<128x128xf32>
    %c0_13 = arith.constant 0 : index
    %c0_14 = arith.constant 0 : index
    %28 = vector.load %arg5[%c0_13, %c0_14] : memref<128x128xf32, #tpu.memory_space<vmem>>, vector<128x128xf32>
    %cst_15 = arith.constant dense<0.000000e+00> : vector<128x128xf32>
    %29 = tpu.matmul %27, %28, %cst_15 {dimension_numbers = #tpu.dot_dimension_numbers<[1], [0], [0], [1], [0, 0, 1, 1], [], []>} : vector<128x128xf32>, vector<128x128xf32>, vector<128x128xf32> -> vector<128x128xf32>
    %cst_16 = arith.constant dense<0.000000e+00> : vector<128xf32>
    %30 = vector.multi_reduction <add>, %29, %cst_16 [0] : vector<128x128xf32> to vector<128xf32>
    %31 = vector.shape_cast %30 : vector<128xf32> to vector<1x128xf32>
    %cst_17 = arith.constant 7.812500e-03 : f32
    %32 = vector.broadcast %cst_17 : f32 to vector<1x128xf32>
    %33 = arith.mulf %31, %32 : vector<1x128xf32>
    %34 = arith.mulf %29, %29 : vector<128x128xf32>
    %cst_18 = arith.constant dense<0.000000e+00> : vector<128xf32>
    %35 = vector.multi_reduction <add>, %34, %cst_18 [0] : vector<128x128xf32> to vector<128xf32>
    %36 = vector.shape_cast %35 : vector<128xf32> to vector<1x128xf32>
    %cst_19 = arith.constant 7.812500e-03 : f32
    %37 = vector.broadcast %cst_19 : f32 to vector<1x128xf32>
    %38 = arith.mulf %36, %37 : vector<1x128xf32>
    %39 = arith.mulf %33, %33 : vector<1x128xf32>
    %40 = arith.subf %38, %39 : vector<1x128xf32>
    %41 = vector.broadcast %33 : vector<1x128xf32> to vector<128x128xf32>
    %42 = arith.subf %29, %41 : vector<128x128xf32>
    %cst_20 = arith.constant 9.99999974E-6 : f32
    %43 = vector.broadcast %cst_20 : f32 to vector<1x128xf32>
    %44 = arith.addf %40, %43 : vector<1x128xf32>
    %45 = math.rsqrt %44 : vector<1x128xf32>
    %46 = vector.broadcast %45 : vector<1x128xf32> to vector<128x128xf32>
    %47 = arith.mulf %42, %46 : vector<128x128xf32>
    %48 = tpu.iota {dimensions = array<i32: 1>} : vector<128x128xi32>
    %c35_i32 = arith.constant 35 : i32
    %49 = vector.broadcast %c35_i32 : i32 to vector<128x128xi32>
    %50 = arith.cmpi slt, %48, %49 : vector<128x128xi32>
    %cst_21 = arith.constant 0xFF800000 : f32
    %51 = vector.broadcast %cst_21 : f32 to vector<128x128xf32>
    %52 = arith.select %50, %47, %51 : vector<128x128xi1>, vector<128x128xf32>
    %cst_22 = arith.constant dense<0xFF800000> : vector<128xf32>
    %53 = vector.multi_reduction <maximumf>, %52, %cst_22 [1] : vector<128x128xf32> to vector<128xf32>
    %54 = vector.shape_cast %53 : vector<128xf32> to vector<128x1xf32>
    %55 = vector.broadcast %54 : vector<128x1xf32> to vector<128x128xf32>
    %56 = arith.subf %52, %55 : vector<128x128xf32>
    %57 = math.exp %56 : vector<128x128xf32>
    %cst_23 = arith.constant dense<0.000000e+00> : vector<128xf32>
    %58 = vector.multi_reduction <add>, %57, %cst_23 [1] : vector<128x128xf32> to vector<128xf32>
    %59 = vector.shape_cast %58 : vector<128xf32> to vector<128x1xf32>
    %60 = math.log %59 : vector<128x1xf32>
    %61 = vector.broadcast %60 : vector<128x1xf32> to vector<128x128xf32>
    %62 = arith.subf %56, %61 : vector<128x128xf32>
    %cst_24 = arith.constant 0.000000e+00 : f32
    %63 = vector.broadcast %cst_24 : f32 to vector<128x128xf32>
    %64 = arith.select %50, %62, %63 : vector<128x128xi1>, vector<128x128xf32>
    %c0_25 = arith.constant 0 : index
    %c0_26 = arith.constant 0 : index
    %65 = vector.load %arg6[%c0_25, %c0_26] : memref<128x128xf32, #tpu.memory_space<vmem>>, vector<128x128xf32>
    tpu.vector_store %arg6[%c0_25, %c0_26], %64 {strides = array<i32>} : memref<128x128xf32, #tpu.memory_space<vmem>>, vector<128x128xf32>,
    return
  }
  func.func @transform_0(%arg0: i32) -> (i32, i32) {
    %c0_i32 = arith.constant 0 : i32
    %c0_i32_0 = arith.constant 0 : i32
    return %arg0, %c0_i32 : i32, i32
  }
  func.func @transform_1(%arg0: i32) -> (i32, i32) {
    %c0_i32 = arith.constant 0 : i32
    %c0_i32_0 = arith.constant 0 : i32
    %c0_i32_1 = arith.constant 0 : i32
    return %c0_i32, %c0_i32_0 : i32, i32
  }
  func.func @transform_2(%arg0: i32) -> (i32, i32) {
    %c0_i32 = arith.constant 0 : i32
    %c0_i32_0 = arith.constant 0 : i32
    %c0_i32_1 = arith.constant 0 : i32
    return %c0_i32, %c0_i32_0 : i32, i32
  }
  func.func @transform_3(%arg0: i32) -> (i32, i32) {
    %c0_i32 = arith.constant 0 : i32
    %c0_i32_0 = arith.constant 0 : i32
    %c0_i32_1 = arith.constant 0 : i32
    return %c0_i32, %c0_i32_0 : i32, i32
  }
  func.func @transform_4(%arg0: i32) -> (i32, i32) {
    %c0_i32 = arith.constant 0 : i32
    %c0_i32_0 = arith.constant 0 : i32
    %c0_i32_1 = arith.constant 0 : i32
    return %c0_i32, %c0_i32_0 : i32, i32
  }
  func.func @transform_5(%arg0: i32) -> (i32, i32) {
    %c0_i32 = arith.constant 0 : i32
    %c0_i32_0 = arith.constant 0 : i32
    return %arg0, %c0_i32 : i32, i32
  }
}

</mosaic_0001>

<bundles_post_ra>
// kernel: gsr2layer_forward.1
= control target key start
LH: loop header
LB: loop body
LE: loop exit
PB: predicated region body
PF: predicated region fallthrough
CT: control target
= control target key end

     0   :  { %10 = vsyncpa [#allocation3], 0  ;;  %s1980_s0 = inlined_call_operand.hbm [shape: f32[512,128], index: 0, kind: input, shape index: {}]   ;;  %s1981_s1 = inlined_call_operand.hbm [shape: f32[128,128], index: 1, kind: input, shape index: {}]   ;;  %s1982_s2 = inlined_call_operand.vmem [shape: f32[1,128], index: 2, kind: input, shape index: {}]   ;;  %s1983_s3 = inlined_call_operand.vmem [shape: f32[1,128], index: 3, kind: input, shape index: {}]   ;;  %s1984_s4 = inlined_call_operand.hbm [shape: f32[128,128], index: 4, kind: input, shape index: {}]   ;;  %s1985_s5 = inlined_call_operand.hbm [shape: f32[512,128], index: 5, kind: output, shape index: {}]  }
   0x1   :  { %12 = vsyncpa [#allocation3 + $0x1], 0 }
   0x2   :  { %13 = vsyncpa [#allocation6], 0 }
   0x3   :  { %14 = vsyncpa [#allocation4], 0 }
   0x4   :  { %16 = vsyncpa [#allocation4 + $0x1], 0  ;;  %s1403_s18 = smov 0   ;;  %s1405_s19 = smov 0  }
   0x5   :  { %s1407_s20 = smov 0   ;;  %s1409_s21 = smov 0  }
   0x6 LB: > { %s1424_s22 = sadd.s32 4294967295, %s1365_s21   ;;  %s1014_s23 = sadd.s32 4294967294, %s1365_s21   ;;  %s1365_s21 = sphi %s1409_s21, %s1996_s21   ;;  %s1361_s20 = sphi %s1407_s20, %s1995_s20   ;;  %s1357_s19 = sphi %s1405_s19, %s1994_s19   ;;  %s1353_s18 = sphi %s1403_s18, %s1993_s18  }
   0x7   : > { %p42_p0 = scmp.ne.s32.totalorder %s1357_s19, %s1353_s18  ;;  %p43_p1 = scmp.eq.s32.totalorder %s1424_s22, 0 }
   0x8   : > { %p150_p2 = scmp.eq.s32.totalorder %s1424_s22, 3  ;;  %p156_p3 = scmp.eq.s32.totalorder %s1014_s23, 3 }
   0x9   : > { %p1433_p4 = por %p43_p1, %p42_p0  ;;  %p1015_p5 = scmp.ge.s32.totalorder %s1365_s21, 1 }
   0xa   : > { %p1438_p6 = por %p156_p3, %p42_p0  ;;  %p163_p7 = scmp.lt.s32.totalorder %s1365_s21, 5 }
   0xb   : > { %s174_s28 = sshll.u32 %s1981_s1, 4  ;;  %s1367_s30 = smov [#allocation5]   ;;  %s175_s28 = int_to_ptr.hbm [resolvable:$true] %s174_s28 }
   0xc   : > { %p1446_p8 = pnand %p1015_p5, %p163_p7  ;;  %s176_s6 = sshll.u32 %s1367_s30, 4  ;;  %s177_s6 = int_to_ptr.vmem [resolvable:$true] %s176_s6 }
   0xd   : > { %s194_s9 = sshll.u32 %s1984_s4, 4  ;;  %s1986_s10 = smov 128   ;;  %s195_s9 = int_to_ptr.hbm [resolvable:$true] %s194_s9 }
   0xe   : > { %p1078_p9 = pneg %p1446_p8  ;;  %s1369_s11 = smov 8  }
   0xf   : > { %s1370_s12 = smov [#allocation7]   ;;  %s1464_s14 = sadd.s32 1, %s1365_s21  }
  0x10   : > { %p1079_p10 = pnand %p1078_p9, %p43_p1  ;;  %s196_s13 = sshll.u32 %s1370_s12, 4  ;;  %s197_s13 = int_to_ptr.vmem [resolvable:$true] %s196_s13 }
  0x11   : > { %s29_s15 = sadd.s32 1, %s1361_s20  ;;  %s26_s16 = ssub.s32 %s1365_s21, %s1464_s14 }
  0x12   : > { %1081 = dma.hbm_to_vmem [thread:$0]  (!%p1079_p10), %s175_s28, 2048, %s177_s6, [#allocation6], %s1986_s10, %s1986_s10, %s1369_s11  }
  0x13   : > { %1084 = dma.hbm_to_vmem [thread:$0]  (!%p1079_p10), %s195_s9, 2048, %s197_s13, [#allocation6], %s1986_s10, %s1986_s10, %s1369_s11  }
  0x14   : > { %p36_p11 = scmp.ne.s32.totalorder %s1361_s20, %s1357_s19  ;;  %p27_p12 = scmp.eq.s32.totalorder %s26_s16, 0 }
  0x15   : > { %p37_p13 = scmp.eq.s32.totalorder %s1365_s21, 0  ;;  %p1095_p3 = scmp.lt.s32.totalorder %s1365_s21, 4 }
  0x16   : > { %p1474_p0 = por %p150_p2, %p36_p11  ;;  %s210_s26 = sand.u32 1, %s1361_s20  }
  0x17   : > { %s1480_s23 = scalar_select %p27_p12, %s1361_s20, %s29_s15  }
  0x18   : > { %p38_p5 = por %p37_p13, %p36_p11  ;;  %s1019_s27 = sshll.u32 %s210_s26, 7 }
  0x19   : > { %s1032_s28 = sshll.u32 %s1365_s21, 7  ;;  %s214_s8 = scalar_lea.vmem [#allocation2], %s1019_s27 }
  0x1a   : > { %s219_s7 = scalar_lea.hbm %s1980_s0, %s1032_s28  ;;  %s222_s9 = sshll.u32 %s214_s8, 4  ;;  %s223_s9 = int_to_ptr.vmem [resolvable:$true] %s222_s9 }
  0x1b   : > { %s220_s12 = sshll.u32 %s219_s7, 4  ;;  %p1487_p2 = pnand %p1095_p3, %p38_p5  ;;  %s221_s12 = int_to_ptr.hbm [resolvable:$true] %s220_s12 }
  0x1c   : > { %s211_s15 = scalar_lea.sflag [#allocation3], %s210_s26  ;;  %s1265_s16 = sshra.s32 %s221_s12, 4  ;;  %s1266_s16 = int_to_ptr.hbm [resolvable:$true] %s1265_s16 }
  0x1d   : > { %s1267_s10 = scalar_lea.hbm %s1266_s16, 128  ;;  %p1269_p9 = pneg %p1487_p2 }
  0x1e   : > { %p1268_p7 = scmp.ne.s32.totalorder %s1266_s16, %s1267_s10  ;;  %s1272_s30 = scalar_lea.hbm %s1980_s0, 512 }
  0x1f   : > { %p1273_p12 = scmp.lt.s32.totalorder %s1266_s16, %s1980_s0  ;;  %p1274_p13 = scmp.lt.s32.totalorder %s1272_s30, %s1267_s10 }
  0x20   : > { %p1270_p10 = pnand %p1269_p9, %p1268_p7 }
  0x21   : > { %p1275_p3 = por %p1274_p13, %p1273_p12 }
  0x22   : > { %p1271_p11 = pneg %p1270_p10 }
  0x24   : > { %p1276_p5 = pnand %p1275_p3, %p1271_p11 }
  0x26   : > { %1279 = shalt.err (!%p1276_p5)
}
  0x27   : > { %s1992_s26 = smov 128   ;;  %234 = sbr.rel (%p1446_p8) target bundleno = 872 (0x368), region = 40 }
  0x28   : > { %1088 = dma.hbm_to_vmem [thread:$0]  (!%p1487_p2), %s221_s12, 2048, %s223_s9, %s211_s15, %s1992_s26, %s1992_s26, %s1369_s11  }
  0x29   : > { %s1507_s8 = sand.u32 (!%p1446_p8), 1, %s1357_s19  }
  0x2a   : > { %s1023_s10 = sshll.u32 (!%p1446_p8), %s1507_s8, 7  ;;  %s237_s16 = scalar_lea.sflag (!%p1446_p8), [#allocation3], %s1507_s8 }
  0x2b   : > { %s1513_s28 = scalar_lea.vmem (!%p1446_p8), [#allocation2], %s1023_s10 }
  0x2c   : > { %1340 = dma.done.wait (%p1433_p4), %s237_s16, 2048  }
  0x2d   : > { %1342 = vsyncadd (%p1433_p4), %s237_s16, 4294965248 }
  0x2e   : > { %1344 = dma.done.wait (%p43_p1), [#allocation6], 4096  }
  0x2f   : > { %1346 = vsyncadd (%p43_p1), [#allocation6], 4294963200  ;;  %v311_v0 = vld [vmem:[#allocation5 + $0x78] sm:$0xff]  ;;  %v310_v1 = vld [vmem:[#allocation5 + $0x70] sm:$0xff]  ;;  %s1887_s12 = scalar_lea.vmem [#allocation8], %s1023_s10  ;;  %s1033_s13 = sshll.u32 %s1424_s22, 7 }
  0x30   : > { %312 = vmatpush.msra.mxu0 %v311_v0  ;;  %1034 = vmatpush.msra.mxu2 %v311_v0  ;;  %v309_v2 = vld [vmem:[#allocation5 + $0x68] sm:$0xff]  ;;  %v308_v3 = vld [vmem:[#allocation5 + $0x60] sm:$0xff]  ;;  %v307_v4 = vld [vmem:[#allocation5 + $0x58] sm:$0xff]  ;;  %s918_s30 = scalar_lea.hbm %s1985_s5, %s1033_s13  ;;  %s919_s22 = sshll.u32 %s1887_s12, 4  ;;  %s920_s22 = int_to_ptr.vmem [resolvable:$true] %s919_s22 }
  0x31   : > { %v306_v5 = vld [vmem:[#allocation5 + $0x50] sm:$0xff]  ;;  %v305_v6 = vld [vmem:[#allocation5 + $0x48] sm:$0xff]  ;;  %v304_v7 = vld [vmem:[#allocation5 + $0x40] sm:$0xff]  ;;  %s921_s6 = sshll.u32 %s918_s30, 4  ;;  %s907_s7 = scalar_lea.sflag [#allocation4], %s1507_s8  ;;  %s922_s6 = int_to_ptr.hbm [resolvable:$true] %s921_s6 }
  0x32   : > { %313 = vmatpush.msra.mxu0 %v310_v1  ;;  %1035 = vmatpush.msra.mxu2 %v310_v1  ;;  %v303_v8 = vld [vmem:[#allocation5 + $0x38] sm:$0xff]  ;;  %v302_v9 = vld [vmem:[#allocation5 + $0x30] sm:$0xff]  ;;  %v301_v10 = vld [vmem:[#allocation5 + $0x28] sm:$0xff]  ;;  %s1309_s26 = sshra.s32 %s922_s6, 4  ;;  %s1315_s24 = scalar_lea.hbm %s1985_s5, 512  ;;  %s1310_s26 = int_to_ptr.hbm [resolvable:$true] %s1309_s26 }
  0x33   : > { %v300_v11 = vld [vmem:[#allocation5 + $0x20] sm:$0xff]  ;;  %v299_v12 = vld [vmem:[#allocation5 + $0x18] sm:$0xff]  ;;  %v298_v13 = vld [vmem:[#allocation5 + $0x10] sm:$0xff]  ;;  %s1311_s10 = scalar_lea.hbm %s1310_s26, 128  ;;  %p1316_p2 = scmp.lt.s32.totalorder %s1310_s26, %s1985_s5 }
  0x34   : > { %314 = vmatpush.msra.mxu0 %v309_v2  ;;  %1036 = vmatpush.msra.mxu2 %v309_v2  ;;  %v297_v14 = vld [vmem:[#allocation5 + $0x8] sm:$0xff]  ;;  %v296_v15 = vld [vmem:[#allocation5] sm:$0xff]  ;;  %v282_v20 = vld [vmem:[%s1513_s28 + $0x10] sm:$0xff]  ;;  %p1312_p1 = scmp.ne.s32.totalorder %s1310_s26, %s1311_s10  ;;  %p1317_p7 = scmp.lt.s32.totalorder %s1315_s24, %s1311_s10 }
  0x35   : > { %v280_v16 = vld [vmem:[%s1513_s28] sm:$0xff]  ;;  %v281_v18 = vld [vmem:[%s1513_s28 + $0x8] sm:$0xff]  ;;  %v290_v21 = vld [vmem:[%s1513_s28 + $0x50] sm:$0xff] }
  0x36   : > { %315 = vmatpush.msra.mxu0 %v308_v3  ;;  %1037 = vmatpush.msra.mxu2 %v308_v3  ;;  %v288_v17 = vld [vmem:[%s1513_s28 + $0x40] sm:$0xff]  ;;  %v289_v19 = vld [vmem:[%s1513_s28 + $0x48] sm:$0xff]  ;;  %v283_v22 = vld [vmem:[%s1513_s28 + $0x18] sm:$0xff]  ;;  %p1313_p4 = pnand %p1312_p1, %p1474_p0  ;;  %p1318_p9 = por %p1317_p7, %p1316_p2 }
  0x37   : > { %v291_v23 = vld [vmem:[%s1513_s28 + $0x58] sm:$0xff]  ;;  %v284_v24 = vld [vmem:[%s1513_s28 + $0x20] sm:$0xff]  ;;  %v285_v26 = vld [vmem:[%s1513_s28 + $0x28] sm:$0xff] }
  0x38   : > { %316 = vmatpush.msra.mxu0 %v307_v4  ;;  %1038 = vmatpush.msra.mxu2 %v307_v4  ;;  %v292_v25 = vld [vmem:[%s1513_s28 + $0x60] sm:$0xff]  ;;  %v293_v27 = vld [vmem:[%s1513_s28 + $0x68] sm:$0xff]  ;;  %v286_v28 = vld [vmem:[%s1513_s28 + $0x30] sm:$0xff]  ;;  %p1314_p8 = pneg %p1313_p4 }
  0x39   : > { %v294_v29 = vld [vmem:[%s1513_s28 + $0x70] sm:$0xff]  ;;  %v287_v30 = vld [vmem:[%s1513_s28 + $0x38] sm:$0xff] }
  0x3a   : > { %317 = vmatpush.msra.mxu0 %v306_v5  ;;  %1039 = vmatpush.msra.mxu2 %v306_v5  ;;  %v295_v31 = vld [vmem:[%s1513_s28 + $0x78] sm:$0xff]  ;;  %p1319_p10 = pnand %p1318_p9, %p1314_p8 }
  0x3c   : > { %318 = vmatpush.msra.mxu0 %v305_v6  ;;  %1040 = vmatpush.msra.mxu2 %v305_v6 }
  0x3e   : > { %319 = vmatpush.msra.mxu0 %v304_v7  ;;  %1041 = vmatpush.msra.mxu2 %v304_v7 }
  0x40   : > { %320 = vmatpush.msra.mxu0 %v303_v8  ;;  %1042 = vmatpush.msra.mxu2 %v303_v8 }
  0x42   : > { %321 = vmatpush.msra.mxu0 %v302_v9  ;;  %1043 = vmatpush.msra.mxu2 %v302_v9 }
  0x44   : > { %322 = vmatpush.msra.mxu0 %v301_v10  ;;  %1044 = vmatpush.msra.mxu2 %v301_v10  ;;  %v524_v10 = vld [vmem:[#allocation7 + $0x78] sm:$0xff] }
  0x45   : > { %525 = vmatpush.msra.mxu1 %v524_v10  ;;  %1050 = vmatpush.msra.mxu3 %v524_v10 }
  0x46   : > { %323 = vmatpush.msra.mxu0 %v300_v11  ;;  %1045 = vmatpush.msra.mxu2 %v300_v11 }
  0x48   : > { %324 = vmatpush.msra.mxu0 %v299_v12  ;;  %1046 = vmatpush.msra.mxu2 %v299_v12 }
  0x4a   : > { %325 = vmatpush.msra.mxu0 %v298_v13  ;;  %1047 = vmatpush.msra.mxu2 %v298_v13 }
  0x4c   : > { %326 = vmatpush.msra.mxu0 %v297_v14  ;;  %1048 = vmatpush.msra.mxu2 %v297_v14  ;;  %v523_v14 = vld [vmem:[#allocation7 + $0x70] sm:$0xff] }
  0x4d   : > { %526 = vmatpush.msra.mxu1 %v523_v14  ;;  %1051 = vmatpush.msra.mxu3 %v523_v14 }
  0x4e   : > { %327 = vmatpush.msra.mxu0 %v296_v15  ;;  %1049 = vmatpush.msra.mxu2 %v296_v15 }
  0x4f   : > { %328 = vmatmul.f32.vlgmr.msra.gmra.mxu0 %v280_v16  ;;  %352 = vmatmul.f32.vlgmr.msra.gmra.mxu2 %v288_v17 }
  0x57   : > { %331 = vmatmul.f32.gmra.mxu0 %v281_v18  ;;  %355 = vmatmul.f32.gmra.mxu2 %v289_v19  ;;  %v522_v18 = vld [vmem:[#allocation7 + $0x68] sm:$0xff] }
  0x58   : > { %527 = vmatpush.msra.mxu1 %v522_v18  ;;  %1052 = vmatpush.msra.mxu3 %v522_v18 }
  0x5f   : > { %334 = vmatmul.f32.gmra.mxu0 %v282_v20  ;;  %358 = vmatmul.f32.gmra.mxu2 %v290_v21 }
  0x67   : > { %337 = vmatmul.f32.gmra.mxu0 %v283_v22  ;;  %361 = vmatmul.f32.gmra.mxu2 %v291_v23  ;;  %v521_v22 = vld [vmem:[#allocation7 + $0x60] sm:$0xff] }
  0x68   : > { %528 = vmatpush.msra.mxu1 %v521_v22  ;;  %1053 = vmatpush.msra.mxu3 %v521_v22 }
  0x6f   : > { %340 = vmatmul.f32.gmra.mxu0 %v284_v24  ;;  %364 = vmatmul.f32.gmra.mxu2 %v292_v25 }
  0x77   : > { %343 = vmatmul.f32.gmra.mxu0 %v285_v26  ;;  %367 = vmatmul.f32.gmra.mxu2 %v293_v27  ;;  %v520_v27 = vld [vmem:[#allocation7 + $0x58] sm:$0xff] }
  0x78   : > { %529 = vmatpush.msra.mxu1 %v520_v27  ;;  %1054 = vmatpush.msra.mxu3 %v520_v27 }
  0x7f   : > { %346 = vmatmul.f32.gmra.mxu0 %v286_v28  ;;  %370 = vmatmul.f32.gmra.mxu2 %v294_v29 }
  0x87   : > { %349 = vmatmul.f32.gmra.mxu0 %v287_v30  ;;  %373 = vmatmul.f32.gmra.mxu2 %v295_v31 }
  0xcc   : > { %v1539_v32 = vpop.f32.mrf.mxu0 }
  0xcd   : > { %v399_v44 = vmul.f32 %v1539_v32, %v1539_v32 }
  0xd2   : > { %v1541_v33 = vpop.f32.mrf.mxu2 }
  0xd3   : > { %v407_v4 = vmul.f32 %v1541_v33, %v1541_v33 }
  0xd4   : > { %v1543_v34 = vpop.f32.mrf.mxu0 }
  0xd5   : > { %v400_v43 = vmul.f32 %v1543_v34, %v1543_v34  ;;  %v377_v45 = vadd.f32 %v1543_v34, %v1539_v32 }
  0xd7   : > { %v415_v47 = vadd.f32 %v400_v43, %v399_v44  ;;  %v519_v43 = vld [vmem:[#allocation7 + $0x50] sm:$0xff] }
  0xd8   : > { %530 = vmatpush.msra.mxu1 %v519_v43  ;;  %1055 = vmatpush.msra.mxu3 %v519_v43 }
  0xda   : > { %v1545_v35 = vpop.f32.mrf.mxu2 }
  0xdb   : > { %v408_v7 = vmul.f32 %v1545_v35, %v1545_v35 }
  0xdc   : > { %v1547_v36 = vpop.f32.mrf.mxu0 }
  0xdd   : > { %v401_v46 = vmul.f32 %v1547_v36, %v1547_v36  ;;  %v378_v48 = vadd.f32 %v377_v45, %v1547_v36 }
  0xdf   : > { %v416_v52 = vadd.f32 %v415_v47, %v401_v46  ;;  %v518_v46 = vld [vmem:[#allocation7 + $0x48] sm:$0xff] }
  0xe0   : > { %531 = vmatpush.msra.mxu1 %v518_v46  ;;  %1056 = vmatpush.msra.mxu3 %v518_v46 }
  0xe2   : > { %v1549_v37 = vpop.f32.mrf.mxu2 }
  0xe3   : > { %v409_v11 = vmul.f32 %v1549_v37, %v1549_v37 }
  0xe4   : > { %v1551_v38 = vpop.f32.mrf.mxu0 }
  0xe5   : > { %v402_v49 = vmul.f32 %v1551_v38, %v1551_v38  ;;  %v379_v53 = vadd.f32 %v378_v48, %v1551_v38 }
  0xe7   : > { %v417_v55 = vadd.f32 %v416_v52, %v402_v49  ;;  %v517_v49 = vld [vmem:[#allocation7 + $0x40] sm:$0xff] }
  0xe8   : > { %532 = vmatpush.msra.mxu1 %v517_v49  ;;  %1057 = vmatpush.msra.mxu3 %v517_v49 }
  0xea   : > { %v1553_v39 = vpop.f32.mrf.mxu2 }
  0xeb   : > { %v410_v15 = vmul.f32 %v1553_v39, %v1553_v39 }
  0xec   : > { %v1555_v40 = vpop.f32.mrf.mxu0 }
  0xed   : > { %v403_v54 = vmul.f32 %v1555_v40, %v1555_v40  ;;  %v380_v56 = vadd.f32 %v379_v53, %v1555_v40 }
  0xef   : > { %v418_v58 = vadd.f32 %v417_v55, %v403_v54  ;;  %v516_v54 = vld [vmem:[#allocation7 + $0x38] sm:$0xff] }
  0xf0   : > { %533 = vmatpush.msra.mxu1 %v516_v54  ;;  %1058 = vmatpush.msra.mxu3 %v516_v54 }
  0xf2   : > { %v1557_v41 = vpop.f32.mrf.mxu2 }
  0xf3   : > { %v411_v19 = vmul.f32 %v1557_v41, %v1557_v41 }
  0xf4   : > { %v1559_v42 = vpop.f32.mrf.mxu0 }
  0xf5   : > { %v404_v57 = vmul.f32 %v1559_v42, %v1559_v42  ;;  %v381_v59 = vadd.f32 %v380_v56, %v1559_v42 }
  0xf7   : > { %v419_v61 = vadd.f32 %v418_v58, %v404_v57  ;;  %v515_v57 = vld [vmem:[#allocation7 + $0x30] sm:$0xff] }
  0xf8   : > { %534 = vmatpush.msra.mxu1 %v515_v57  ;;  %1059 = vmatpush.msra.mxu3 %v515_v57 }
  0xfa   : > { %v1574_v51 = vpop.f32.mrf.mxu2 }
  0xfb   : > { %v412_v25 = vmul.f32 %v1574_v51, %v1574_v51 }
  0xfc   : > { %v1572_v50 = vpop.f32.mrf.mxu0 }
  0xfd   : > { %v405_v60 = vmul.f32 %v1572_v50, %v1572_v50  ;;  %v382_v62 = vadd.f32 %v381_v59, %v1572_v50 }
  0xff   : > { %v420_v0 = vadd.f32 %v419_v61, %v405_v60  ;;  %v514_v60 = vld [vmem:[#allocation7 + $0x28] sm:$0xff] }
 0x100   : > { %535 = vmatpush.msra.mxu1 %v514_v60  ;;  %1060 = vmatpush.msra.mxu3 %v514_v60 }
 0x102   : > { %v1591_v3 = vpop.f32.mrf.mxu2 }
 0x103   : > { %v413_v30 = vmul.f32 %v1591_v3, %v1591_v3 }
 0x104   : > { %v1586_v63 = vpop.f32.mrf.mxu0 }
 0x105   : > { %v383_v1 = vadd.f32 %v382_v62, %v1586_v63  ;;  %v406_v2 = vmul.f32 %v1586_v63, %v1586_v63 }
 0x107   : > { %v384_v5 = vadd.f32 %v383_v1, %v1541_v33  ;;  %v421_v6 = vadd.f32 %v420_v0, %v406_v2  ;;  %v513_v0 = vld [vmem:[#allocation7 + $0x20] sm:$0xff] }
 0x108   : > { %536 = vmatpush.msra.mxu1 %v513_v0  ;;  %1061 = vmatpush.msra.mxu3 %v513_v0 }
 0x109   : > { %v385_v8 = vadd.f32 %v384_v5, %v1545_v35  ;;  %v422_v9 = vadd.f32 %v421_v6, %v407_v4  ;;  %v512_v4 = vld [vmem:[#allocation7 + $0x18] sm:$0xff] }
 0x10a   : > { %v1608_v23 = vpop.f32.mrf.mxu2  ;;  %537 = vmatpush.msra.mxu1 %v512_v4  ;;  %1062 = vmatpush.msra.mxu3 %v512_v4 }
 0x10b   : > { %v386_v12 = vadd.f32 %v385_v8, %v1549_v37  ;;  %v423_v13 = vadd.f32 %v422_v9, %v408_v7  ;;  %v414_v31 = vmul.f32 %v1608_v23, %v1608_v23  ;;  %v511_v7 = vld [vmem:[#allocation7 + $0x10] sm:$0xff]  ;;  %v510_v8 = vld [vmem:[#allocation7 + $0x8] sm:$0xff] }
 0x10c   : > { %538 = vmatpush.msra.mxu1 %v511_v7  ;;  %1063 = vmatpush.msra.mxu3 %v511_v7 }
 0x10d   : > { %v424_v16 = vadd.f32 %v423_v13, %v409_v11  ;;  %v387_v17 = vadd.f32 %v386_v12, %v1553_v39  ;;  %v509_v11 = vld [vmem:[#allocation7] sm:$0xff] }
 0x10e   : > { %539 = vmatpush.msra.mxu1 %v510_v8  ;;  %1064 = vmatpush.msra.mxu3 %v510_v8 }
 0x10f   : > { %v388_v20 = vadd.f32 %v387_v17, %v1557_v41  ;;  %v425_v21 = vadd.f32 %v424_v16, %v410_v15 }
 0x110   : > { %540 = vmatpush.msra.mxu1 %v509_v11  ;;  %1065 = vmatpush.msra.mxu3 %v509_v11 }
 0x111   : > { %v389_v24 = vadd.f32 %v388_v20, %v1574_v51  ;;  %v426_v26 = vadd.f32 %v425_v21, %v411_v19  ;;  %v439_v19 = vld [vmem:[%s1982_s2] sm:$0x1] }
 0x113   : > { %v427_v28 = vadd.f32 %v426_v26, %v412_v25  ;;  %v390_v29 = vadd.f32 %v389_v24, %v1591_v3  ;;  %v471_v24 = vld [vmem:[%s1983_s3] sm:$0x1] }
 0x115   : > { %v428_v44 = vadd.f32 %v427_v28, %v413_v30  ;;  %v391_v45 = vadd.f32 %v390_v29, %v1608_v23 }
 0x117   : > { %v392_v47 = vrot.slane %v391_v45, 4  ;;  %v429_v48 = vadd.f32 %v428_v44, %v414_v31 }
 0x119   : > { %v393_v52 = vadd.f32 %v392_v47, %v391_v45  ;;  %v430_v53 = vrot.slane %v429_v48, 4 }
 0x11b   : > { %v394_v55 = vrot.slane %v393_v52, 2  ;;  %v431_v56 = vadd.f32 %v430_v53, %v429_v48 }
 0x11d   : > { %v395_v58 = vadd.f32 %v394_v55, %v393_v52  ;;  %v432_v59 = vrot.slane %v431_v56, 2 }
 0x11f   : > { %v396_v61 = vrot.slane %v395_v58, 1  ;;  %v433_v62 = vadd.f32 %v432_v59, %v431_v56 }
 0x121   : > { %v397_v1 = vadd.f32 %v396_v61, %v395_v58  ;;  %v434_v2 = vrot.slane %v433_v62, 1 }
 0x123   : > { %v398_v5 = vmul.f32 0.0078125, %v397_v1  ;;  %v435_v6 = vadd.f32 %v434_v2, %v433_v62 }
 0x125   : > { %v436_v9 = vmul.f32 0.0078125, %v435_v6  ;;  %v437_v10 = vmul.f32 %v398_v5, %v398_v5 }
 0x127   : > { %v438_v12 = vsub.f32 %v436_v9, %v437_v10 }
 0x129   : > { %v440_v13 = vadd.f32 1e-05, %v438_v12 }
 0x12b   : > { %1137 = vrsqrt.f32 %v440_v13  ;;  %vm447_vm1 = vweird.f32 %v440_v13 }
 0x131   : > { %v1138_v14 = vpop.eup %1137 }
 0x132   : > { %v442_v15 = vmul.f32 %v1138_v14, %v440_v13  ;;  %vm448_vm0 = vweird.f32 %v1138_v14 }
 0x133   : > { %vm449_vm2 = vmor %vm447_vm1, %vm448_vm0 }
 0x134   : > { %v443_v16 = vmul.f32 %v1138_v14, %v442_v15 }
 0x136   : > { %v444_v17 = vmul.f32 0.5, %v443_v16 }
 0x138   : > { %v445_v18 = vsub.f32 1.5, %v444_v17 }
 0x13a   : > { %v446_v20 = vmul.f32 %v1138_v14, %v445_v18 }
 0x13c   : > { %v450_v21 = vsel %vm449_vm2, %v1138_v14, %v446_v20 }
 0x13d   : > { %v451_v22 = vmul.f32 %v450_v21, %v439_v19 }
 0x13f   : > { %v453_v25 = vperm.slane %v451_v22, 0  ;;  %v472_v26 = vmul.f32 %v451_v22, %v398_v5 }
 0x141   : > { %v473_v27 = vsub.f32 %v471_v24, %v472_v26  ;;  %v455_v29 = vmul.f32 %v453_v25, %v1539_v32  ;;  %v463_v30 = vmul.f32 %v453_v25, %v1541_v33  ;;  %v456_v46 = vmul.f32 %v453_v25, %v1543_v34 }
 0x142   : > { %v464_v47 = vmul.f32 %v453_v25, %v1545_v35  ;;  %v457_v32 = vmul.f32 %v453_v25, %v1547_v36  ;;  %v465_v33 = vmul.f32 %v453_v25, %v1549_v37  ;;  %v458_v34 = vmul.f32 %v453_v25, %v1551_v38 }
 0x143   : > { %v475_v28 = vperm.slane %v473_v27, 0  ;;  %v466_v35 = vmul.f32 %v453_v25, %v1553_v39  ;;  %v459_v36 = vmul.f32 %v453_v25, %v1555_v40  ;;  %v467_v37 = vmul.f32 %v453_v25, %v1557_v41 }
 0x144   : > { %v460_v38 = vmul.f32 %v453_v25, %v1559_v42  ;;  %v468_v39 = vmul.f32 %v453_v25, %v1574_v51  ;;  %v461_v40 = vmul.f32 %v453_v25, %v1572_v50  ;;  %v469_v41 = vmul.f32 %v453_v25, %v1591_v3 }
 0x145   : > { %v477_v31 = vadd.f32 %v475_v28, %v455_v29  ;;  %v485_v43 = vadd.f32 %v475_v28, %v463_v30  ;;  %v478_v48 = vadd.f32 %v475_v28, %v456_v46  ;;  %v486_v49 = vadd.f32 %v475_v28, %v464_v47 }
 0x146   : > { %v479_v54 = vadd.f32 %v475_v28, %v457_v32  ;;  %v487_v55 = vadd.f32 %v475_v28, %v465_v33  ;;  %v480_v58 = vadd.f32 %v475_v28, %v458_v34  ;;  %v488_v59 = vadd.f32 %v475_v28, %v466_v35 }
 0x147   : > { %v493_v44 = vmax.f32 %v477_v31, 0.0  ;;  %v501_v45 = vmax.f32 %v485_v43, 0.0  ;;  %v494_v52 = vmax.f32 %v478_v48, 0.0  ;;  %v502_v53 = vmax.f32 %v486_v49, 0.0 }
 0x148   : > { %v495_v56 = vmax.f32 %v479_v54, 0.0  ;;  %v503_v57 = vmax.f32 %v487_v55, 0.0  ;;  %v496_v60 = vmax.f32 %v480_v58, 0.0  ;;  %v504_v61 = vmax.f32 %v488_v59, 0.0 }
 0x149   : > { %541 = vmatmul.f32.vlgmr.msra.gmra.mxu1 %v493_v44  ;;  %565 = vmatmul.f32.vlgmr.msra.gmra.mxu3 %v501_v45  ;;  %v481_v62 = vadd.f32 %v475_v28, %v459_v36  ;;  %v489_v0 = vadd.f32 %v475_v28, %v467_v37  ;;  %v482_v4 = vadd.f32 %v475_v28, %v460_v38 }
 0x14a   : > { %v490_v5 = vadd.f32 %v475_v28, %v468_v39  ;;  %v483_v8 = vadd.f32 %v475_v28, %v461_v40  ;;  %v491_v9 = vadd.f32 %v475_v28, %v469_v41  ;;  %v470_v12 = vmul.f32 %v453_v25, %v1608_v23 }
 0x14b   : > { %v497_v1 = vmax.f32 %v481_v62, 0.0  ;;  %v505_v2 = vmax.f32 %v489_v0, 0.0  ;;  %v498_v6 = vmax.f32 %v482_v4, 0.0  ;;  %v462_v42 = vmul.f32 %v453_v25, %v1586_v63 }
 0x14c   : > { %v506_v7 = vmax.f32 %v490_v5, 0.0  ;;  %v499_v10 = vmax.f32 %v483_v8, 0.0  ;;  %v507_v11 = vmax.f32 %v491_v9, 0.0  ;;  %v492_v13 = vadd.f32 %v475_v28, %v470_v12 }
 0x14d   : > { %v484_v51 = vadd.f32 %v475_v28, %v462_v42 }
 0x14e   : > { %v508_v15 = vmax.f32 %v492_v13, 0.0 }
 0x14f   : > { %v500_v14 = vmax.f32 %v484_v51, 0.0 }
 0x151   : > { %544 = vmatmul.f32.gmra.mxu1 %v494_v52  ;;  %568 = vmatmul.f32.gmra.mxu3 %v502_v53 }
 0x159   : > { %547 = vmatmul.f32.gmra.mxu1 %v495_v56  ;;  %571 = vmatmul.f32.gmra.mxu3 %v503_v57 }
 0x161   : > { %550 = vmatmul.f32.gmra.mxu1 %v496_v60  ;;  %574 = vmatmul.f32.gmra.mxu3 %v504_v61 }
 0x169   : > { %553 = vmatmul.f32.gmra.mxu1 %v497_v1  ;;  %577 = vmatmul.f32.gmra.mxu3 %v505_v2 }
 0x171   : > { %556 = vmatmul.f32.gmra.mxu1 %v498_v6  ;;  %580 = vmatmul.f32.gmra.mxu3 %v506_v7 }
 0x179   : > { %559 = vmatmul.f32.gmra.mxu1 %v499_v10  ;;  %583 = vmatmul.f32.gmra.mxu3 %v507_v11 }
 0x181   : > { %562 = vmatmul.f32.gmra.mxu1 %v500_v14  ;;  %586 = vmatmul.f32.gmra.mxu3 %v508_v15 }
 0x1c6   : > { %v1641_v16 = vpop.f32.mrf.mxu1 }
 0x1c7   : > { %v612_v25 = vmul.f32 %v1641_v16, %v1641_v16 }
 0x1cc   : > { %v1643_v50 = vpop.f32.mrf.mxu3 }
 0x1cd   : > { %v620_v35 = vmul.f32 %v1643_v50, %v1643_v50 }
 0x1ce   : > { %v1645_v3 = vpop.f32.mrf.mxu1 }
 0x1cf   : > { %v613_v24 = vmul.f32 %v1645_v3, %v1645_v3  ;;  %v590_v26 = vadd.f32 %v1645_v3, %v1641_v16 }
 0x1d1   : > { %v628_v28 = vadd.f32 %v613_v24, %v612_v25 }
 0x1d4   : > { %v1647_v17 = vpop.f32.mrf.mxu3 }
 0x1d5   : > { %v621_v61 = vmul.f32 %v1647_v17, %v1647_v17 }
 0x1d6   : > { %v1649_v18 = vpop.f32.mrf.mxu1 }
 0x1d7   : > { %v614_v27 = vmul.f32 %v1649_v18, %v1649_v18  ;;  %v591_v29 = vadd.f32 %v590_v26, %v1649_v18 }
 0x1d9   : > { %v629_v43 = vadd.f32 %v628_v28, %v614_v27 }
 0x1dc   : > { %v1651_v23 = vpop.f32.mrf.mxu3 }
 0x1dd   : > { %v622_v62 = vmul.f32 %v1651_v23, %v1651_v23 }
 0x1de   : > { %v1653_v19 = vpop.f32.mrf.mxu1 }
 0x1df   : > { %v615_v30 = vmul.f32 %v1653_v19, %v1653_v19  ;;  %v592_v44 = vadd.f32 %v591_v29, %v1653_v19 }
 0x1e1   : > { %v630_v47 = vadd.f32 %v629_v43, %v615_v30 }
 0x1e4   : > { %v1655_v63 = vpop.f32.mrf.mxu3 }
 0x1e5   : > { %v623_v2 = vmul.f32 %v1655_v63, %v1655_v63 }
 0x1e6   : > { %v1657_v20 = vpop.f32.mrf.mxu1 }
 0x1e7   : > { %v616_v45 = vmul.f32 %v1657_v20, %v1657_v20  ;;  %v593_v48 = vadd.f32 %v592_v44, %v1657_v20 }
 0x1e9   : > { %v631_v52 = vadd.f32 %v630_v47, %v616_v45 }
 0x1ec   : > { %v1659_v21 = vpop.f32.mrf.mxu3 }
 0x1ed   : > { %v624_v4 = vmul.f32 %v1659_v21, %v1659_v21 }
 0x1ee   : > { %v1661_v22 = vpop.f32.mrf.mxu1 }
 0x1ef   : > { %v617_v49 = vmul.f32 %v1661_v22, %v1661_v22  ;;  %v594_v53 = vadd.f32 %v593_v48, %v1661_v22 }
 0x1f1   : > { %v632_v33 = vadd.f32 %v631_v52, %v617_v49 }
 0x1f4   : > { %v1679_v46 = vpop.f32.mrf.mxu3 }
 0x1f5   : > { %v625_v7 = vmul.f32 %v1679_v46, %v1679_v46 }
 0x1f6   : > { %v1674_v31 = vpop.f32.mrf.mxu1 }
 0x1f7   : > { %v618_v32 = vmul.f32 %v1674_v31, %v1674_v31  ;;  %v595_v54 = vadd.f32 %v594_v53, %v1674_v31 }
 0x1f9   : > { %v633_v56 = vadd.f32 %v632_v33, %v618_v32 }
 0x1fc   : > { %v1696_v60 = vpop.f32.mrf.mxu3 }
 0x1fd   : > { %v626_v9 = vmul.f32 %v1696_v60, %v1696_v60 }
 0x1fe   : > { %v1688_v55 = vpop.f32.mrf.mxu1 }
 0x1ff   : > { %v596_v57 = vadd.f32 %v595_v54, %v1688_v55  ;;  %v619_v34 = vmul.f32 %v1688_v55, %v1688_v55 }
 0x201   : > { %v597_v58 = vadd.f32 %v596_v57, %v1643_v50  ;;  %v634_v59 = vadd.f32 %v633_v56, %v619_v34  ;;  %v695_v57 = vlaneseq }
 0x203   : > { %v598_v36 = vadd.f32 %v597_v58, %v1647_v17  ;;  %v635_v37 = vadd.f32 %v634_v59, %v620_v35  ;;  %v1727_v58 = vand.u32 127, %v695_v57 }
 0x204   : > { %v1713_v8 = vpop.f32.mrf.mxu3 }
 0x205   : > { %v599_v0 = vadd.f32 %v598_v36, %v1651_v23  ;;  %v636_v1 = vadd.f32 %v635_v37, %v621_v61  ;;  %v627_v42 = vmul.f32 %v1713_v8, %v1713_v8  ;;  %vm697_vm6 = vcmp.lt.s32.totalorder %v1727_v58, 35 }
 0x207   : > { %v637_v38 = vadd.f32 %v636_v1, %v622_v62  ;;  %v600_v39 = vadd.f32 %v599_v0, %v1655_v63 }
 0x209   : > { %v601_v5 = vadd.f32 %v600_v39, %v1659_v21  ;;  %v638_v6 = vadd.f32 %v637_v38, %v623_v2 }
 0x20b   : > { %v602_v40 = vadd.f32 %v601_v5, %v1679_v46  ;;  %v639_v41 = vadd.f32 %v638_v6, %v624_v4 }
 0x20d   : > { %v603_v10 = vadd.f32 %v602_v40, %v1696_v60  ;;  %v640_v11 = vadd.f32 %v639_v41, %v625_v7 }
 0x20f   : > { %v604_v12 = vadd.f32 %v603_v10, %v1713_v8  ;;  %v641_v51 = vadd.f32 %v640_v11, %v626_v9 }
 0x211   : > { %v605_v13 = vrot.slane %v604_v12, 4  ;;  %v642_v14 = vadd.f32 %v641_v51, %v627_v42 }
 0x213   : > { %v606_v15 = vadd.f32 %v605_v13, %v604_v12  ;;  %v643_v24 = vrot.slane %v642_v14, 4 }
 0x215   : > { %v607_v25 = vrot.slane %v606_v15, 2  ;;  %v644_v26 = vadd.f32 %v643_v24, %v642_v14 }
 0x217   : > { %v608_v27 = vadd.f32 %v607_v25, %v606_v15  ;;  %v645_v28 = vrot.slane %v644_v26, 2 }
 0x219   : > { %v609_v29 = vrot.slane %v608_v27, 1  ;;  %v646_v30 = vadd.f32 %v645_v28, %v644_v26 }
 0x21b   : > { %v610_v43 = vadd.f32 %v609_v29, %v608_v27  ;;  %v647_v44 = vrot.slane %v646_v30, 1 }
 0x21d   : > { %v1721_v45 = vmul.f32 0.0078125, %v610_v43  ;;  %v648_v47 = vadd.f32 %v647_v44, %v646_v30 }
 0x21f   : > { %v649_v48 = vmul.f32 0.0078125, %v648_v47  ;;  %v650_v49 = vmul.f32 %v1721_v45, %v1721_v45  ;;  %v667_v52 = vsub.f32 %v1713_v8, %v1721_v45  ;;  %v656_v61 = vsub.f32 %v1657_v20, %v1721_v45 }
 0x220   : > { %v654_v36 = vsub.f32 %v1649_v18, %v1721_v45  ;;  %v652_v37 = vsub.f32 %v1641_v16, %v1721_v45  ;;  %v657_v16 = vsub.f32 %v1661_v22, %v1721_v45  ;;  %v655_v18 = vsub.f32 %v1653_v19, %v1721_v45 }
 0x221   : > { %v651_v53 = vsub.f32 %v649_v48, %v650_v49  ;;  %v653_v4 = vsub.f32 %v1645_v3, %v1721_v45  ;;  %v660_v19 = vsub.f32 %v1643_v50, %v1721_v45  ;;  %v659_v3 = vsub.f32 %v1688_v55, %v1721_v45 }
 0x222   : > { %v658_v9 = vsub.f32 %v1674_v31, %v1721_v45  ;;  %v663_v31 = vsub.f32 %v1655_v63, %v1721_v45  ;;  %v662_v55 = vsub.f32 %v1651_v23, %v1721_v45  ;;  %v661_v13 = vsub.f32 %v1647_v17, %v1721_v45 }
 0x223   : > { %v668_v32 = vadd.f32 1e-05, %v651_v53  ;;  %v666_v17 = vsub.f32 %v1696_v60, %v1721_v45  ;;  %v665_v63 = vsub.f32 %v1679_v46, %v1721_v45  ;;  %v664_v27 = vsub.f32 %v1659_v21, %v1721_v45 }
 0x225   : > { %1139 = vrsqrt.f32 %v668_v32  ;;  %vm675_vm4 = vweird.f32 %v668_v32 }
 0x22b   : > { %v1140_v33 = vpop.eup %1139 }
 0x22c   : > { %v670_v54 = vmul.f32 %v1140_v33, %v668_v32  ;;  %vm676_vm3 = vweird.f32 %v1140_v33 }
 0x22d   : > { %vm677_vm5 = vmor %vm675_vm4, %vm676_vm3 }
 0x22e   : > { %v671_v56 = vmul.f32 %v1140_v33, %v670_v54 }
 0x230   : > { %v672_v34 = vmul.f32 0.5, %v671_v56 }
 0x232   : > { %v673_v35 = vsub.f32 1.5, %v672_v34 }
 0x234   : > { %v674_v59 = vmul.f32 %v1140_v33, %v673_v35 }
 0x236   : > { %v678_v62 = vsel %vm677_vm5, %v1140_v33, %v674_v59 }
 0x237   : > { %v683_v0 = vmul.f32 %v678_v62, %v656_v61  ;;  %v681_v1 = vmul.f32 %v678_v62, %v654_v36  ;;  %v679_v2 = vmul.f32 %v678_v62, %v652_v37  ;;  %v684_v5 = vmul.f32 %v678_v62, %v657_v16 }
 0x238   : > { %v682_v6 = vmul.f32 %v678_v62, %v655_v18  ;;  %v680_v7 = vmul.f32 %v678_v62, %v653_v4  ;;  %v687_v10 = vmul.f32 %v678_v62, %v660_v19  ;;  %v686_v11 = vmul.f32 %v678_v62, %v659_v3 }
 0x239   : > { %v1738_v38 = vsel %vm697_vm6, %v683_v0, -inf  ;;  %v700_v39 = vsel %vm697_vm6, %v681_v1, -inf  ;;  %v698_v20 = vsel %vm697_vm6, %v679_v2, -inf  ;;  %v703_v40 = vsel %vm697_vm6, %v684_v5, -inf }
 0x23a   : > { %722 = vmax.xlane.f32.xlu2 %v1738_v38  ;;  %718 = vmax.xlane.f32.xlu1 %v700_v39  ;;  %v701_v41 = vsel %vm697_vm6, %v682_v6, -inf  ;;  %v699_v22 = vsel %vm697_vm6, %v680_v7, -inf  ;;  %v685_v12 = vmul.f32 %v678_v62, %v658_v9  ;;  %v706_v42 = vsel %vm697_vm6, %v687_v10, -inf }
 0x23b   : > { %714 = vmax.xlane.f32.xlu0 %v698_v20  ;;  %v1767_v51 = vsel %vm697_vm6, %v686_v11, -inf  ;;  %v690_v14 = vmul.f32 %v678_v62, %v663_v31  ;;  %v689_v15 = vmul.f32 %v678_v62, %v662_v55  ;;  %v688_v24 = vmul.f32 %v678_v62, %v661_v13 }
 0x23c   : > { %v704_v50 = vsel %vm697_vm6, %v685_v12, -inf  ;;  %v693_v28 = vmul.f32 %v678_v62, %v666_v17  ;;  %v692_v29 = vmul.f32 %v678_v62, %v665_v63  ;;  %v691_v30 = vmul.f32 %v678_v62, %v664_v27 }
 0x23d   : > { %v1780_v25 = vsel %vm697_vm6, %v690_v14, -inf  ;;  %v1784_v26 = vsel %vm697_vm6, %v689_v15, -inf  ;;  %v1790_v23 = vsel %vm697_vm6, %v688_v24, -inf  ;;  %v694_v21 = vmul.f32 %v678_v62, %v667_v52 }
 0x23e   : > { %v1801_v43 = vsel %vm697_vm6, %v693_v28, -inf  ;;  %v1805_v44 = vsel %vm697_vm6, %v692_v29, -inf  ;;  %v1811_v46 = vsel %vm697_vm6, %v691_v30, -inf }
 0x23f   : > { %v1819_v60 = vsel %vm697_vm6, %v694_v21, -inf }
 0x242   : > { %724 = vmax.xlane.f32.xlu2 %v703_v40  ;;  %720 = vmax.xlane.f32.xlu1 %v701_v41 }
 0x243   : > { %716 = vmax.xlane.f32.xlu0 %v699_v22 }
 0x24a   : > { %730 = vmax.xlane.f32.xlu2 %v706_v42  ;;  %728 = vmax.xlane.f32.xlu1 %v1767_v51 }
 0x24b   : > { %726 = vmax.xlane.f32.xlu0 %v704_v50 }
 0x252   : > { %736 = vmax.xlane.f32.xlu2 %v1780_v25  ;;  %734 = vmax.xlane.f32.xlu1 %v1784_v26 }
 0x253   : > { %732 = vmax.xlane.f32.xlu0 %v1790_v23 }
 0x25a   : > { %742 = vmax.xlane.f32.xlu2 %v1801_v43  ;;  %740 = vmax.xlane.f32.xlu1 %v1805_v44 }
 0x25b   : > { %738 = vmax.xlane.f32.xlu0 %v1811_v46 }
 0x263   : > { %744 = vmax.xlane.f32.xlu0 %v1819_v60 }
 0x2ad   : > { %v723_v47 = vpop.xlane.xlu2 %722  ;;  %v719_v48 = vpop.xlane.xlu1 %718 }
 0x2ae   : > { %v1822_v49 = vsub.f32 %v700_v39, %v719_v48  ;;  %v715_v53 = vpop.xlane.xlu0 %714  ;;  %v1838_v62 = vsub.f32 %v1738_v38, %v723_v47 }
 0x2af   : > { %v1824_v32 = vsub.f32 %v698_v20, %v715_v53 }
 0x2b0   : > { %v766_v33 = vmul.f32 1.442695, %v1822_v49  ;;  %v770_v20 = vmul.f32 1.442695, %v1838_v62 }
 0x2b1   : > { %v762_v54 = vmul.f32 1.442695, %v1824_v32 }
 0x2b2   : > { %1141 = vpow2.f32 %v766_v33 }
 0x2b3   : > { %1143 = vpow2.f32 %v762_v54 }
 0x2b5   : > { %v725_v8 = vpop.xlane.xlu2 %724  ;;  %v721_v45 = vpop.xlane.xlu1 %720 }
 0x2b6   : > { %v1828_v52 = vsub.f32 %v703_v40, %v725_v8  ;;  %v1830_v56 = vsub.f32 %v701_v41, %v721_v45  ;;  %v717_v57 = vpop.xlane.xlu0 %716 }
 0x2b7   : > { %v1832_v34 = vsub.f32 %v699_v22, %v717_v57 }
 0x2b8   : > { %v772_v35 = vmul.f32 1.442695, %v1828_v52  ;;  %v768_v59 = vmul.f32 1.442695, %v1830_v56  ;;  %v1142_v61 = vpop.eup %1141 }
 0x2b9   : > { %v764_v36 = vmul.f32 1.442695, %v1832_v34  ;;  %v1144_v37 = vpop.eup %1143  ;;  %798 = vadd.xlane.f32.xlu0 %v1142_v61 }
 0x2ba   : > { %1145 = vpow2.f32 %v772_v35  ;;  %794 = vadd.xlane.f32.xlu1 %v1144_v37 }
 0x2bb   : > { %1147 = vpow2.f32 %v768_v59 }
 0x2bc   : > { %1149 = vpow2.f32 %v764_v36 }
 0x2bd   : > { %v731_v0 = vpop.xlane.xlu2 %730  ;;  %v729_v1 = vpop.xlane.xlu1 %728 }
 0x2be   : > { %v1840_v2 = vsub.f32 %v706_v42, %v731_v0  ;;  %v727_v39 = vpop.xlane.xlu0 %726  ;;  %v1848_v7 = vsub.f32 %v1767_v51, %v729_v1 }
 0x2bf   : > { %v1843_v16 = vsub.f32 %v704_v50, %v727_v39 }
 0x2c0   : > { %v1146_v18 = vpop.eup %1145  ;;  %v778_v4 = vmul.f32 1.442695, %v1840_v2  ;;  %v776_v19 = vmul.f32 1.442695, %v1848_v7 }
 0x2c1   : > { %v1148_v5 = vpop.eup %1147  ;;  %v774_v6 = vmul.f32 1.442695, %v1843_v16  ;;  %804 = vadd.xlane.f32.xlu0 %v1146_v18 }
 0x2c2   : > { %v1150_v38 = vpop.eup %1149  ;;  %1151 = vpow2.f32 %v778_v4  ;;  %800 = vadd.xlane.f32.xlu1 %v1148_v5 }
 0x2c3   : > { %1153 = vpow2.f32 %v770_v20  ;;  %796 = vadd.xlane.f32.xlu2 %v1150_v38 }
 0x2c4   : > { %1155 = vpow2.f32 %v774_v6 }
 0x2c5   : > { %v737_v40 = vpop.xlane.xlu2 %736  ;;  %v735_v3 = vpop.xlane.xlu1 %734 }
 0x2c6   : > { %v1851_v41 = vsub.f32 %v1780_v25, %v737_v40  ;;  %v733_v22 = vpop.xlane.xlu0 %732  ;;  %v1860_v50 = vsub.f32 %v1784_v26, %v735_v3 }
 0x2c7   : > { %v1855_v9 = vsub.f32 %v1790_v23, %v733_v22 }
 0x2c8   : > { %v1152_v10 = vpop.eup %1151  ;;  %v784_v11 = vmul.f32 1.442695, %v1851_v41  ;;  %v782_v14 = vmul.f32 1.442695, %v1860_v50 }
 0x2c9   : > { %v1154_v12 = vpop.eup %1153  ;;  %v780_v42 = vmul.f32 1.442695, %v1855_v9  ;;  %810 = vadd.xlane.f32.xlu0 %v1152_v10 }
 0x2ca   : > { %v1156_v51 = vpop.eup %1155  ;;  %1157 = vpow2.f32 %v784_v11 }
 0x2cb   : > { %1159 = vpow2.f32 %v776_v19  ;;  %802 = vadd.xlane.f32.xlu2 %v1154_v12  ;;  %806 = vadd.xlane.f32.xlu1 %v1156_v51 }
 0x2cc   : > { %1161 = vpow2.f32 %v780_v42 }
 0x2cd   : > { %v743_v31 = vpop.xlane.xlu2 %742  ;;  %v741_v17 = vpop.xlane.xlu1 %740 }
 0x2ce   : > { %v1863_v55 = vsub.f32 %v1801_v43, %v743_v31  ;;  %v739_v13 = vpop.xlane.xlu0 %738  ;;  %v1872_v27 = vsub.f32 %v1805_v44, %v741_v17 }
 0x2cf   : > { %v1867_v15 = vsub.f32 %v1811_v46, %v739_v13 }
 0x2d0   : > { %v1158_v24 = vpop.eup %1157  ;;  %v790_v25 = vmul.f32 1.442695, %v1863_v55  ;;  %v788_v43 = vmul.f32 1.442695, %v1872_v27 }
 0x2d1   : > { %v1160_v23 = vpop.eup %1159  ;;  %v786_v26 = vmul.f32 1.442695, %v1867_v15  ;;  %816 = vadd.xlane.f32.xlu0 %v1158_v24 }
 0x2d2   : > { %v1162_v63 = vpop.eup %1161  ;;  %1163 = vpow2.f32 %v790_v25 }
 0x2d3   : > { %1165 = vpow2.f32 %v782_v14  ;;  %808 = vadd.xlane.f32.xlu2 %v1160_v23  ;;  %812 = vadd.xlane.f32.xlu1 %v1162_v63 }
 0x2d4   : > { %1167 = vpow2.f32 %v786_v26 }
 0x2d6   : > { %v745_v28 = vpop.xlane.xlu0 %744 }
 0x2d7   : > { %v1875_v29 = vsub.f32 %v1819_v60, %v745_v28 }
 0x2d8   : > { %v1164_v30 = vpop.eup %1163 }
 0x2d9   : > { %v1166_v46 = vpop.eup %1165  ;;  %v792_v21 = vmul.f32 1.442695, %v1875_v29  ;;  %822 = vadd.xlane.f32.xlu0 %v1164_v30 }
 0x2da   : > { %v1168_v47 = vpop.eup %1167 }
 0x2db   : > { %1169 = vpow2.f32 %v792_v21  ;;  %814 = vadd.xlane.f32.xlu2 %v1166_v46  ;;  %818 = vadd.xlane.f32.xlu1 %v1168_v47 }
 0x2dc   : > { %1171 = vpow2.f32 %v788_v43 }
 0x2e1   : > { %v1170_v48 = vpop.eup %1169 }
 0x2e2   : > { %v1172_v44 = vpop.eup %1171 }
 0x2e3   : > { %820 = vadd.xlane.f32.xlu2 %v1172_v44  ;;  %824 = vadd.xlane.f32.xlu1 %v1170_v48 }
 0x32c   : > { %v799_v53 = vpop.xlane.xlu0 %798 }
 0x32d   : > { %v795_v33 = vpop.xlane.xlu1 %794  ;;  %1173 = vlog2.f32 %v799_v53 }
 0x32e   : > { %1175 = vlog2.f32 %v795_v33 }
 0x333   : > { %v1174_v60 = vpop.eup %1173 }
 0x334   : > { %v1176_v54 = vpop.eup %1175  ;;  %v831_v8 = vmul.f32 0.6931472, %v1174_v60  ;;  %v805_v45 = vpop.xlane.xlu0 %804 }
 0x335   : > { %v827_v57 = vmul.f32 0.6931472, %v1176_v54  ;;  %v801_v35 = vpop.xlane.xlu1 %800  ;;  %1177 = vlog2.f32 %v805_v45 }
 0x336   : > { %v797_v59 = vpop.xlane.xlu2 %796  ;;  %v860_v61 = vsub.f32 %v1822_v49, %v831_v8  ;;  %1179 = vlog2.f32 %v801_v35 }
 0x337   : > { %v858_v36 = vsub.f32 %v1824_v32, %v827_v57  ;;  %1181 = vlog2.f32 %v797_v59 }
 0x338   : > { %v876_v37 = vsel %vm697_vm6, %v860_v61, 0.0 }
 0x339   : > { %v874_v0 = vsel %vm697_vm6, %v858_v36, 0.0  ;;  %892 = vst [vmem:[%s1887_s12 + $0x10] sm:$0xff] %v876_v37 }
 0x33a   : > { %890 = vst [vmem:[%s1887_s12] sm:$0xff] %v874_v0 }
 0x33b   : > { %v1178_v1 = vpop.eup %1177 }
 0x33c   : > { %v1180_v39 = vpop.eup %1179  ;;  %v837_v49 = vmul.f32 0.6931472, %v1178_v1  ;;  %v811_v32 = vpop.xlane.xlu0 %810 }
 0x33d   : > { %v1182_v20 = vpop.eup %1181  ;;  %v833_v18 = vmul.f32 0.6931472, %v1180_v39  ;;  %1183 = vlog2.f32 %v811_v32 }
 0x33e   : > { %v803_v4 = vpop.xlane.xlu2 %802  ;;  %v807_v5 = vpop.xlane.xlu1 %806  ;;  %v829_v6 = vmul.f32 0.6931472, %v1182_v20  ;;  %v863_v38 = vsub.f32 %v1828_v52, %v837_v49 }
 0x33f   : > { %1185 = vlog2.f32 %v803_v4  ;;  %v861_v40 = vsub.f32 %v1830_v56, %v833_v18 }
 0x340   : > { %1187 = vlog2.f32 %v807_v5  ;;  %v859_v22 = vsub.f32 %v1832_v34, %v829_v6  ;;  %v879_v19 = vsel %vm697_vm6, %v863_v38, 0.0 }
 0x341   : > { %v877_v3 = vsel %vm697_vm6, %v861_v40, 0.0  ;;  %895 = vst [vmem:[%s1887_s12 + $0x28] sm:$0xff] %v879_v19 }
 0x342   : > { %893 = vst [vmem:[%s1887_s12 + $0x18] sm:$0xff] %v877_v3  ;;  %v875_v10 = vsel %vm697_vm6, %v859_v22, 0.0 }
 0x343   : > { %v1184_v11 = vpop.eup %1183  ;;  %891 = vst [vmem:[%s1887_s12 + $0x8] sm:$0xff] %v875_v10 }
 0x344   : > { %v843_v12 = vmul.f32 0.6931472, %v1184_v11  ;;  %v817_v56 = vpop.xlane.xlu0 %816 }
 0x345   : > { %v1186_v52 = vpop.eup %1185  ;;  %1189 = vlog2.f32 %v817_v56 }
 0x346   : > { %v1188_v42 = vpop.eup %1187  ;;  %v835_v34 = vmul.f32 0.6931472, %v1186_v52  ;;  %v809_v51 = vpop.xlane.xlu2 %808  ;;  %v866_v14 = vsub.f32 %v1840_v2, %v843_v12 }
 0x347   : > { %v813_v31 = vpop.xlane.xlu1 %812  ;;  %v839_v13 = vmul.f32 0.6931472, %v1188_v42  ;;  %1191 = vlog2.f32 %v809_v51 }
 0x348   : > { %v862_v24 = vsub.f32 %v1838_v62, %v835_v34  ;;  %1193 = vlog2.f32 %v813_v31  ;;  %v882_v23 = vsel %vm697_vm6, %v866_v14, 0.0 }
 0x349   : > { %v864_v25 = vsub.f32 %v1843_v16, %v839_v13  ;;  %898 = vst [vmem:[%s1887_s12 + $0x40] sm:$0xff] %v882_v23 }
 0x34a   : > { %v878_v17 = vsel %vm697_vm6, %v862_v24, 0.0 }
 0x34b   : > { %894 = vst [vmem:[%s1887_s12 + $0x20] sm:$0xff] %v878_v17  ;;  %v880_v26 = vsel %vm697_vm6, %v864_v25, 0.0  ;;  %v1190_v63 = vpop.eup %1189 }
 0x34c   : > { %896 = vst [vmem:[%s1887_s12 + $0x30] sm:$0xff] %v880_v26  ;;  %v849_v28 = vmul.f32 0.6931472, %v1190_v63  ;;  %v823_v62 = vpop.xlane.xlu0 %822 }
 0x34d   : > { %v1192_v2 = vpop.eup %1191  ;;  %1195 = vlog2.f32 %v823_v62 }
 0x34e   : > { %v1194_v30 = vpop.eup %1193  ;;  %v841_v16 = vmul.f32 0.6931472, %v1192_v2  ;;  %v815_v43 = vpop.xlane.xlu2 %814  ;;  %v869_v47 = vsub.f32 %v1851_v41, %v849_v28 }
 0x34f   : > { %v819_v46 = vpop.xlane.xlu1 %818  ;;  %v845_v21 = vmul.f32 0.6931472, %v1194_v30  ;;  %1197 = vlog2.f32 %v815_v43 }
 0x350   : > { %v865_v48 = vsub.f32 %v1848_v7, %v841_v16  ;;  %1199 = vlog2.f32 %v819_v46  ;;  %v885_v53 = vsel %vm697_vm6, %v869_v47, 0.0 }
 0x351   : > { %v867_v44 = vsub.f32 %v1855_v9, %v845_v21  ;;  %901 = vst [vmem:[%s1887_s12 + $0x58] sm:$0xff] %v885_v53 }
 0x352   : > { %v881_v33 = vsel %vm697_vm6, %v865_v48, 0.0 }
 0x353   : > { %897 = vst [vmem:[%s1887_s12 + $0x38] sm:$0xff] %v881_v33  ;;  %v883_v60 = vsel %vm697_vm6, %v867_v44, 0.0  ;;  %v1196_v54 = vpop.eup %1195 }
 0x354   : > { %899 = vst [vmem:[%s1887_s12 + $0x48] sm:$0xff] %v883_v60  ;;  %v855_v7 = vmul.f32 0.6931472, %v1196_v54 }
 0x355   : > { %v1198_v41 = vpop.eup %1197 }
 0x356   : > { %v1200_v8 = vpop.eup %1199  ;;  %v847_v9 = vmul.f32 0.6931472, %v1198_v41  ;;  %v821_v45 = vpop.xlane.xlu2 %820  ;;  %v872_v59 = vsub.f32 %v1863_v55, %v855_v7 }
 0x357   : > { %v825_v57 = vpop.xlane.xlu1 %824  ;;  %v851_v35 = vmul.f32 0.6931472, %v1200_v8  ;;  %1201 = vlog2.f32 %v821_v45 }
 0x358   : > { %v868_v61 = vsub.f32 %v1860_v50, %v847_v9  ;;  %1203 = vlog2.f32 %v825_v57  ;;  %v888_v37 = vsel %vm697_vm6, %v872_v59, 0.0 }
 0x359   : > { %v870_v36 = vsub.f32 %v1867_v15, %v851_v35  ;;  %904 = vst [vmem:[%s1887_s12 + $0x70] sm:$0xff] %v888_v37 }
 0x35a   : > { %v884_v0 = vsel %vm697_vm6, %v868_v61, 0.0 }
 0x35b   : > { %900 = vst [vmem:[%s1887_s12 + $0x50] sm:$0xff] %v884_v0  ;;  %v886_v55 = vsel %vm697_vm6, %v870_v36, 0.0 }
 0x35c   : > { %902 = vst [vmem:[%s1887_s12 + $0x60] sm:$0xff] %v886_v55 }
 0x35d   : > { %v1202_v50 = vpop.eup %1201 }
 0x35e   : > { %v1204_v15 = vpop.eup %1203  ;;  %v853_v1 = vmul.f32 0.6931472, %v1202_v50 }
 0x35f   : > { %v857_v39 = vmul.f32 0.6931472, %v1204_v15 }
 0x360   : > { %v871_v49 = vsub.f32 %v1872_v27, %v853_v1 }
 0x361   : > { %v873_v32 = vsub.f32 %v1875_v29, %v857_v39 }
 0x362   : > { %v887_v20 = vsel %vm697_vm6, %v871_v49, 0.0 }
 0x363   : > { %903 = vst [vmem:[%s1887_s12 + $0x68] sm:$0xff] %v887_v20  ;;  %v889_v18 = vsel %vm697_vm6, %v873_v32, 0.0 }
 0x364   : > { %905 = vst [vmem:[%s1887_s12 + $0x78] sm:$0xff] %v889_v18 }
 0x365   : > { %1322 = shalt.err (!%p1319_p10)
}
 0x366   : > { %s1371_s8 = smov 128   ;;  %s1372_s9 = smov 8  }
 0x367   : > { %1076 = dma.vmem_to_hbm [thread:$0]  (%p1474_p0), %s920_s22, 2048, %s922_s6, %s907_s7, %s1371_s8, %s1371_s8, %s1372_s9  }
 0x368 PF: > { %p1098_p11 = scmp.ge.s32.totalorder %s1365_s21, 2  ;;  %s936_s12 = sand.u32 1, %s1353_s18  }
 0x369   : > { %s937_s13 = scalar_lea.sflag [#allocation4], %s936_s12 }
 0x36a   : > { %p1090_p12 = pnand %p1098_p11, %p1438_p6 }
 0x36c   : > { %p1091_p13 = pneg %p1090_p12 }
 0x36e   : > { %1348 = dma.done.wait (%p1091_p13), %s937_s13, 2048  }
 0x36f   : > { %1350 = vsyncadd (%p1091_p13), %s937_s13, 4294965248  ;;  %p19_p3 = scmp.ge.s32.totalorder %s1464_s14, 6   ;;  %s1993_s18 = smov %s1357_s19 }
 0x370   : > { %s1994_s19 = smov %s1361_s20  ;;  %s1995_s20 = smov %s1480_s23 }
 0x371   : > { %s1996_s21 = smov %s1464_s14  ;;  %21 = sbr.rel (!%p19_p3) target bundleno = 6 (0x6), region = 93 }
 0x376   :  { %943 = vsyncpa [#allocation3], 1 }
 0x377   :  { %945 = vsyncpa [#allocation3 + $0x1], 1 }
 0x378   :  { %946 = vsyncpa [#allocation6], 1 }
 0x379   :  { %947 = vsyncpa [#allocation4], 1 }
 0x37a   :  { %949 = vsyncpa [#allocation4 + $0x1], 1 }

</bundles_post_ra>
